<compile_context>
chip_gen: v7x
topology: tpu7x:2x2x1
jax: 0.10.0
libtpu: 0.0.40
codegen_flags: <defaults>
</compile_context>

<pallas_src>
import functools

import jax
import jax.numpy as jnp
from jax import lax
from jax.experimental import pallas as pl
from jax.experimental.pallas import tpu as pltpu

LANE = 128
SUBLANE = 8
MAX_BLOCK_ROWS = 2048  # 2048 x 128 x f32 = 1 MiB per input tile


def _round_up(x: int, m: int) -> int:
    return ((x + m - 1) // m) * m


def _rmse_kernel(yhat_ref, y_ref, out_ref, acc_ref, *,
                 block_rows, valid_rows, inv_total, eps, need_mask):
    i = pl.program_id(0)

    @pl.when(i == 0)
    def _():
        acc_ref[...] = jnp.zeros_like(acc_ref)

    # Upcast per tile (keeps HBM traffic at the input dtype width).
    d = yhat_ref[...].astype(jnp.float32) - y_ref[...].astype(jnp.float32)
    sq = d * d

    if need_mask:
        # Rows past the logical end of the flattened input belong to the
        # block overhang; their contents are undefined, so zero them.  The
        # select is elementwise VALU work, hidden under the DMA on every
        # block and only semantically active on the last one.
        row = i * block_rows + lax.broadcasted_iota(jnp.int32, sq.shape, 0)
        sq = jnp.where(row < valid_rows, sq, jnp.float32(0.0))

    # Lane-parallel partial sums; the sublane reduce goes to the XLU slot.
    acc_ref[...] += jnp.sum(sq, axis=0, keepdims=True)

    @pl.when(i == pl.num_programs(0) - 1)
    def _():
        total_sq = jnp.sum(acc_ref[...], keepdims=True)          # (1, 1)
        mse = total_sq * jnp.float32(inv_total)                  # mul, not div
        out_ref[...] = jnp.sqrt(mse + jnp.float32(eps))


def rmse_loss(yhat: jax.Array, y: jax.Array, eps: float = 1e-6) -> jax.Array:
    """sqrt(mean((yhat - y)**2) + eps), computed in a Pallas reduction kernel."""
    assert yhat.shape == y.shape, "yhat and y must have identical shapes"
    total_elems = yhat.size

    yf = jnp.ravel(yhat)
    xf = jnp.ravel(y)

    # Only pad when the element count isn't a multiple of the lane width
    # (at most 127 zero elements, which contribute 0 to the sum).
    rem = total_elems % LANE
    if rem:
        pad = LANE - rem
        yf = jnp.pad(yf, (0, pad))
        xf = jnp.pad(xf, (0, pad))

    rows = yf.size // LANE
    yf = yf.reshape(rows, LANE)
    xf = xf.reshape(rows, LANE)

    # Biggest block that fits the VMEM budget; small inputs get one block.
    block_rows = min(MAX_BLOCK_ROWS, _round_up(rows, SUBLANE))
    n_blocks = pl.cdiv(rows, block_rows)
    need_mask = (rows % block_rows) != 0

    kernel = functools.partial(
        _rmse_kernel,
        block_rows=block_rows,
        valid_rows=rows,
        inv_total=1.0 / float(total_elems),
        eps=float(eps),
        need_mask=need_mask,
    )

    out = pl.pallas_call(
        kernel,
        out_shape=jax.ShapeDtypeStruct((1, 1), jnp.float32),
        grid_spec=pltpu.PrefetchScalarGridSpec(
            num_scalar_prefetch=0,
            grid=(n_blocks,),
            in_specs=[
                pl.BlockSpec((block_rows, LANE), lambda i: (i, 0)),
                pl.BlockSpec((block_rows, LANE), lambda i: (i, 0)),
            ],
            out_specs=pl.BlockSpec((1, 1), lambda i: (0, 0)),
            scratch_shapes=[pltpu.VMEM((1, LANE), jnp.float32)],
        ),
        compiler_params=pltpu.CompilerParams(
            dimension_semantics=("arbitrary",),  # sequential reduction axis
        ),
    )(yf, xf)
    return out[0, 0]


if __name__ == "__main__":
    key = jax.random.PRNGKey(0)
    k1, k2 = jax.random.split(key)
    # Small NCHW-like shapes (batch=2, channels=4, spatial=16x16).
    yhat = jax.random.normal(k1, (2, 4, 16, 16), dtype=jnp.float32)
    y = jax.random.normal(k2, (2, 4, 16, 16), dtype=jnp.float32)

    loss = rmse_loss(yhat, y)
    jax.block_until_ready(loss)

    # Reference check against plain JAX (same semantics as the torch module).
    ref = jnp.sqrt(jnp.mean((yhat - y) ** 2) + 1e-6)
    assert jnp.allclose(loss, ref, rtol=1e-5, atol=1e-6), (loss, ref)

    print("KERNEL_OK")
</pallas_src>

<mosaic_0001>
module attributes {stable_mosaic.version = 11 : i64} {
  func.func @_rmse_kernel(%arg0: i32, %arg1: memref<16x128xf32, #tpu.memory_space<vmem>>, %arg2: memref<16x128xf32, #tpu.memory_space<vmem>>, %arg3: memref<1x1xf32, #tpu.memory_space<vmem>>, %arg4: memref<1x128xf32, #tpu.memory_space<vmem>>) attributes {dimension_semantics = [#tpu.dimension_semantics<arbitrary>], iteration_bounds = array<i64: 1>, scalar_prefetch = 0 : i64, scratch_operands = 1 : i64, tpu.core_type = #tpu.core_type<tc>, window_params = [{transform_indices = @transform_0, window_bounds = array<i64: 16, 128>}, {transform_indices = @transform_1, window_bounds = array<i64: 16, 128>}, {pipeline_mode = #tpu.pipeline_mode<synchronous>, transform_indices = @transform_2, window_bounds = array<i64: 1, 1>}]} {
    %c0_i32 = arith.constant 0 : i32
    %0 = arith.cmpi eq, %arg0, %c0_i32 : i32
    %1 = arith.extui %0 : i1 to i32
    %c0_i32_0 = arith.constant 0 : i32
    %2 = arith.cmpi ne, %1, %c0_i32_0 : i32
    scf.if %2 {
      %cst_10 = arith.constant 0.000000e+00 : f32
      %15 = vector.broadcast %cst_10 : f32 to vector<1x128xf32>
      %c0_11 = arith.constant 0 : index
      %c0_12 = arith.constant 0 : index
      %16 = vector.load %arg4[%c0_11, %c0_12] : memref<1x128xf32, #tpu.memory_space<vmem>>, vector<1x128xf32>
      tpu.vector_store %arg4[%c0_11, %c0_12], %15 {strides = array<i32>} : memref<1x128xf32, #tpu.memory_space<vmem>>, vector<1x128xf32>,
    } else {
    }
    %c0 = arith.constant 0 : index
    %c0_1 = arith.constant 0 : index
    %3 = vector.load %arg1[%c0, %c0_1] : memref<16x128xf32, #tpu.memory_space<vmem>>, vector<16x128xf32>
    %c0_2 = arith.constant 0 : index
    %c0_3 = arith.constant 0 : index
    %4 = vector.load %arg2[%c0_2, %c0_3] : memref<16x128xf32, #tpu.memory_space<vmem>>, vector<16x128xf32>
    %5 = arith.subf %3, %4 : vector<16x128xf32>
    %6 = arith.mulf %5, %5 : vector<16x128xf32>
    %c0_4 = arith.constant 0 : index
    %c0_5 = arith.constant 0 : index
    %7 = vector.load %arg4[%c0_4, %c0_5] : memref<1x128xf32, #tpu.memory_space<vmem>>, vector<1x128xf32>
    %cst = arith.constant dense<0.000000e+00> : vector<128xf32>
    %8 = vector.multi_reduction <add>, %6, %cst [0] : vector<16x128xf32> to vector<128xf32>
    %9 = vector.shape_cast %8 : vector<128xf32> to vector<1x128xf32>
    %10 = arith.addf %7, %9 : vector<1x128xf32>
    %c0_6 = arith.constant 0 : index
    %c0_7 = arith.constant 0 : index
    %11 = vector.load %arg4[%c0_6, %c0_7] : memref<1x128xf32, #tpu.memory_space<vmem>>, vector<1x128xf32>
    tpu.vector_store %arg4[%c0_6, %c0_7], %10 {strides = array<i32>} : memref<1x128xf32, #tpu.memory_space<vmem>>, vector<1x128xf32>,
    %c0_i32_8 = arith.constant 0 : i32
    %12 = arith.cmpi eq, %arg0, %c0_i32_8 : i32
    %13 = arith.extui %12 : i1 to i32
    %c0_i32_9 = arith.constant 0 : i32
    %14 = arith.cmpi ne, %13, %c0_i32_9 : i32
    scf.if %14 {
      %c0_10 = arith.constant 0 : index
      %c0_11 = arith.constant 0 : index
      %15 = vector.load %arg4[%c0_10, %c0_11] : memref<1x128xf32, #tpu.memory_space<vmem>>, vector<1x128xf32>
      %16 = vector.shape_cast %15 : vector<1x128xf32> to vector<1x1x128xf32>
      %cst_12 = arith.constant dense<0.000000e+00> : vector<1xf32>
      %17 = vector.multi_reduction <add>, %16, %cst_12 [1, 2] : vector<1x1x128xf32> to vector<1xf32>
      %18 = vector.shape_cast %17 : vector<1xf32> to vector<1x1x1xf32>
      %19 = vector.extract %18[0, 0, 0] : f32 from vector<1x1x1xf32>
      %20 = vector.broadcast %19 : f32 to vector<1x1xf32>
      %cst_13 = arith.constant 4.8828125E-4 : f32
      %21 = vector.broadcast %cst_13 : f32 to vector<1x1xf32>
      %22 = arith.mulf %20, %21 : vector<1x1xf32>
      %cst_14 = arith.constant 9.99999997E-7 : f32
      %23 = vector.broadcast %cst_14 : f32 to vector<1x1xf32>
      %24 = arith.addf %22, %23 : vector<1x1xf32>
      %25 = math.sqrt %24 : vector<1x1xf32>
      %c0_15 = arith.constant 0 : index
      %c0_16 = arith.constant 0 : index
      %26 = vector.load %arg3[%c0_15, %c0_16] : memref<1x1xf32, #tpu.memory_space<vmem>>, vector<1x1xf32>
      tpu.vector_store %arg3[%c0_15, %c0_16], %25 {strides = array<i32>} : memref<1x1xf32, #tpu.memory_space<vmem>>, vector<1x1xf32>,
    } else {
    }
    return
  }
  func.func @transform_0(%arg0: i32) -> (i32, i32) {
    %c0_i32 = arith.constant 0 : i32
    %c0_i32_0 = arith.constant 0 : i32
    return %arg0, %c0_i32 : i32, i32
  }
  func.func @transform_1(%arg0: i32) -> (i32, i32) {
    %c0_i32 = arith.constant 0 : i32
    %c0_i32_0 = arith.constant 0 : i32
    return %arg0, %c0_i32 : i32, i32
  }
  func.func @transform_2(%arg0: i32) -> (i32, i32) {
    %c0_i32 = arith.constant 0 : i32
    %c0_i32_0 = arith.constant 0 : i32
    %c0_i32_1 = arith.constant 0 : i32
    return %c0_i32, %c0_i32_0 : i32, i32
  }
}

</mosaic_0001>

<bundles_post_ra>
// kernel: tpu_custom_call.1
= control target key start
LH: loop header
LB: loop body
LE: loop exit
PB: predicated region body
PF: predicated region fallthrough
CT: control target
= control target key end

     0   :  { %7 = vsyncpa [#allocation4], 0  ;;  %s245_s0 = inlined_call_operand.hbm [shape: f32[16,128], index: 0, kind: input, shape index: {}]   ;;  %s246_s1 = inlined_call_operand.hbm [shape: f32[16,128], index: 1, kind: input, shape index: {}]   ;;  %s247_s2 = inlined_call_operand.hbm [shape: f32[1,1], index: 2, kind: output, shape index: {}]  }
   0x1   :  { %8 = vsyncpa [#allocation7], 0 }
   0x2   :  { %9 = vsyncpa [#allocation5], 0  ;;  %s188_s9 = smov [#allocation3]   ;;  %s116_s13 = scalar_lea.hbm %s245_s0, 256 }
   0x3   :  { %s15_s10 = sshll.u32 %s188_s9, 4  ;;  %p117_p0 = scmp.ne.s32.totalorder %s245_s0, %s116_s13  ;;  %s16_s10 = int_to_ptr.vmem [resolvable:$true] %s15_s10 }
   0x4   :  { %p120_p1 = scmp.lt.u32.totalorder %s116_s13, %s245_s0 }
   0x6   :  { %p122_p2 = pnand %p120_p1, %p117_p0 }
   0x8   :  { %125 = shalt.err (!%p122_p2)
}
   0x9   :  { %s126_s18 = scalar_lea.vmem %s16_s10, 256  ;;  %p131_p4 = scmp.lt.s32.totalorder %s16_s10, %s16_s10 }
   0xa   :  { %p127_p3 = scmp.ne.s32.totalorder %s16_s10, %s126_s18  ;;  %p132_p5 = scmp.lt.s32.totalorder %s126_s18, %s126_s18 }
   0xc   :  { %p133_p6 = por %p132_p5, %p131_p4 }
   0xe   :  { %p134_p7 = pnand %p133_p6, %p127_p3 }
  0x10   :  { %137 = shalt.err (!%p134_p7)
}
  0x11   :  { %s189_s19 = smov 128   ;;  %s190_s20 = smov 8  }
  0x12   :  { %21 = dma.hbm_to_vmem [thread:$0]  %s245_s0, 256, %s16_s10, [#allocation4], %s189_s19, %s189_s19, %s190_s20  }
  0x13   :  { %s191_s23 = smov [#allocation6]   ;;  %s138_s27 = scalar_lea.hbm %s246_s1, 256 }
  0x14   :  { %s27_s24 = sshll.u32 %s191_s23, 4  ;;  %p139_p8 = scmp.ne.s32.totalorder %s246_s1, %s138_s27  ;;  %s28_s24 = int_to_ptr.vmem [resolvable:$true] %s27_s24 }
  0x15   :  { %p142_p9 = scmp.lt.u32.totalorder %s138_s27, %s246_s1 }
  0x17   :  { %p144_p10 = pnand %p142_p9, %p139_p8 }
  0x19   :  { %147 = shalt.err (!%p144_p10)
}
  0x1a   :  { %s148_s4 = scalar_lea.vmem %s28_s24, 256  ;;  %p153_p12 = scmp.lt.s32.totalorder %s28_s24, %s28_s24 }
  0x1b   :  { %p149_p11 = scmp.ne.s32.totalorder %s28_s24, %s148_s4  ;;  %p154_p13 = scmp.lt.s32.totalorder %s148_s4, %s148_s4 }
  0x1d   :  { %p155_p0 = por %p154_p13, %p153_p12 }
  0x1f   :  { %p156_p1 = pnand %p155_p0, %p149_p11 }
  0x21   :  { %159 = shalt.err (!%p156_p1)
}
  0x22   :  { %33 = dma.hbm_to_vmem [thread:$0]  %s246_s1, 256, %s28_s24, [#allocation7], %s189_s19, %s189_s19, %s190_s20  }
  0x23   :  { %182 = dma.done.wait [#allocation4], 256  }
  0x24   :  { %183 = vsyncadd [#allocation4], 4294967040 }
  0x25   :  { %184 = dma.done.wait [#allocation7], 256  }
  0x26   :  { %185 = vsyncadd [#allocation7], 4294967040  ;;  %v192_v0 = vmov 0.0   ;;  %v45_v1 = vld [vmem:[#allocation3] sm:$0xff]  ;;  %v46_v2 = vld [vmem:[#allocation3 + $0x8] sm:$0xff]  ;;  %vm67_vm0 = vcmask 1040384  }
  0x27   :  { %44 = vst [vmem:[#allocation2] sm:$0x1] %v192_v0  ;;  %v47_v3 = vld [vmem:[#allocation6] sm:$0xff]  ;;  %v48_v4 = vld [vmem:[#allocation6 + $0x8] sm:$0xff]  ;;  %s193_s6 = smov [#allocation8]   ;;  %vm88_vm2 = vcmask 0  }
  0x28   :  { %v49_v5 = vsub.f32 %v45_v1, %v47_v3  ;;  %v50_v6 = vsub.f32 %v46_v2, %v48_v4  ;;  %s96_s7 = sshll.u32 %s193_s6, 4  ;;  %s97_s7 = int_to_ptr.vmem [resolvable:$true] %s96_s7 }
  0x29   :  { %s160_s8 = scalar_lea.vmem %s97_s7, 16  ;;  %s164_s9 = scalar_lea.vmem %s97_s7, 32 }
  0x2a   :  { %v51_v7 = vmul.f32 %v49_v5, %v49_v5  ;;  %v52_v8 = vmul.f32 %v50_v6, %v50_v6  ;;  %p161_p2 = scmp.ne.s32.totalorder %s97_s7, %s160_s8  ;;  %p165_p3 = scmp.lt.s32.totalorder %s97_s7, %s97_s7 }
  0x2b   :  { %p166_p4 = scmp.lt.s32.totalorder %s164_s9, %s160_s8 }
  0x2c   :  { %v54_v9 = vadd.f32 %v52_v8, %v51_v7 }
  0x2d   :  { %p167_p5 = por %p166_p4, %p165_p3 }
  0x2e   :  { %v55_v10 = vrot.slane %v54_v9, 4  ;;  %v53_v15 = vld [vmem:[#allocation2] sm:$0x1] }
  0x2f   :  { %p168_p6 = pnand %p167_p5, %p161_p2 }
  0x30   :  { %v56_v11 = vadd.f32 %v55_v10, %v54_v9 }
  0x32   :  { %v57_v12 = vrot.slane %v56_v11, 2 }
  0x34   :  { %v58_v13 = vadd.f32 %v57_v12, %v56_v11 }
  0x36   :  { %v59_v14 = vrot.slane %v58_v13, 1 }
  0x38   :  { %v60_v16 = vadd.f32 %v59_v14, %v58_v13 }
  0x3a   :  { %v61_v17 = vadd.f32 %v60_v16, %v53_v15 }
  0x3c   :  { %62 = vst [vmem:[#allocation2] sm:$0x1] %v61_v17 }
  0x43   :  { %v66_v18 = vld [vmem:[#allocation2] sm:$0x1] }
  0x44   :  { %v68_v19 = vsel %vm67_vm0, %v66_v18, 0.0 }
  0x45   :  { %69 = vadd.xlane.f32.xlu0 %v68_v19 }
  0xd2   :  { %v70_v20 = vpop.xlane.xlu0 %69 }
  0xd3   :  { %v71_v21 = vrot.slane %v70_v20, 4 }
  0xd5   :  { %v72_v22 = vadd.f32 %v71_v21, %v70_v20 }
  0xd7   :  { %v73_v23 = vrot.slane %v72_v22, 2 }
  0xd9   :  { %v74_v24 = vadd.f32 %v73_v23, %v72_v22 }
  0xdb   :  { %v75_v25 = vrot.slane %v74_v24, 1 }
  0xdd   :  { %v76_v26 = vadd.f32 %v75_v25, %v74_v24 }
  0xdf   :  { %106 = vpush %v76_v26 }
 0x110   :  { %s107_s1 = spop %106 }
 0x111   :  { %v78_v27 = vstv %s107_s1 }
 0x112   :  { %v79_v28 = vmul.f32 0.00048828125, %v78_v27 }
 0x114   :  { %v80_v29 = vadd.f32 1e-06, %v79_v28 }
 0x116   :  { %114 = vrsqrt.f32 %v80_v29  ;;  %vm83_vm1 = vcmp.eq.f32.partialorder %v80_v29, inf  ;;  %v86_v32 = vand.u32 2147483648, %v80_v29  ;;  %vm85_vm3 = vcmp.eq.f32.partialorder %v80_v29, 0.0 }
 0x120   :  { %v115_v30 = vpop.eup %114 }
 0x121   :  { %v82_v31 = vmul.f32 %v115_v30, %v80_v29 }
 0x123   :  { %v84_v33 = vsel %vm83_vm1, %v80_v29, %v82_v31 }
 0x124   :  { %v87_v34 = vsel %vm85_vm3, %v86_v32, %v84_v33 }
 0x125   :  { %89 = vst.msk [vmem:[#allocation8] sm:$0x1] %vm88_vm2, %v87_v34 }
 0x126   :  { %171 = shalt.err (!%p168_p6)
}
 0x127   :  { %s172_s12 = scalar_lea.hbm %s247_s2, 16 }
 0x128   :  { %p173_p7 = scmp.ne.s32.totalorder %s247_s2, %s172_s12  ;;  %p176_p8 = scmp.lt.u32.totalorder %s172_s12, %s247_s2 }
 0x12a   :  { %p178_p9 = pnand %p176_p8, %p173_p7 }
 0x12c   :  { %181 = shalt.err (!%p178_p9)
}
 0x12d   :  { %99 = dma.vmem_to_hbm [thread:$0]  %s97_s7, 16, %s247_s2, [#allocation5]  }
 0x12e   :  { %186 = dma.done.wait [#allocation5], 16  }
 0x12f   :  { %187 = vsyncadd [#allocation5], 4294967280 }
 0x130   :  { %103 = vsyncpa [#allocation4], 1 }
 0x131   :  { %104 = vsyncpa [#allocation7], 1 }
 0x132   :  { %105 = vsyncpa [#allocation5], 1 }

</bundles_post_ra>
